<compile_context>
chip_gen: v5e
topology: v5e:2x2
jax: 0.10.0
libtpu: 0.0.40
codegen_flags: <defaults>
</compile_context>

<pallas_src>
import functools

import numpy as np

import jax
import jax.numpy as jnp
from jax.experimental import pallas as pl
from jax.experimental.pallas import tpu as pltpu

NP = 128          # padded node count (lane axis)
HID = 8           # hidden_channels of the GCN (sublane axis -> exactly one tile)
NUM_LAYERS = 4

# ---- column layout of the packed parameter slab (HID, NP) ------------------
_W1_COL = 0                    # w1: (HID, 1)   -> column 0
_W2_COLS = (8, 16)             # w2: (HID, HID) -> columns  8..15
_W3_COLS = (16, 24)            # w3: (HID, HID) -> columns 16..23
_W4_COLS = (24, 32)            # w4: (HID, HID) -> columns 24..31
_B_COL0 = 32                   # b1..b4: columns 32, 33, 34, 35


def gcn4_kernel(a_ref, sel_ref, x_ref, p_ref, o_ref):
    """Fused 4-layer GCN (feature-major) + per-graph node selection.

    a_ref  : [NP, NP]   symmetric normalized adjacency Â (zero-padded)
    sel_ref: [NP, NP]   one-hot selection matrix S (column j = e_{idx[j]})
    x_ref  : [1,  NP]   input node feature (in_channels = 1), feature-major
    p_ref  : [HID, NP]  packed parameter slab (see column layout above)
    o_ref  : [HID, NP]  columns 0..num_graphs-1 hold the selected embeddings
    """
    a = a_ref[...]                                   # 16 vregs; fine at 16/64

    # ---- layer 1: in_channels = 1  ->  W1 @ G0 is a rank-1 outer product ----
    w1 = p_ref[:, _W1_COL:_W1_COL + 1]               # (HID, 1)
    b1 = p_ref[:, _B_COL0 + 0:_B_COL0 + 1]
    hw = w1 * x_ref[...]                             # (HID,1)*(1,NP) -> (HID,NP) (VPU)
    g = jnp.dot(hw, a, preferred_element_type=jnp.float32) + b1
    g = jnp.maximum(g, 0.0)

    def layer(g, w, b, relu):
        hw = jnp.dot(w, g, preferred_element_type=jnp.float32)        # [8,8]@[8,NP]
        g_new = jnp.dot(hw, a, preferred_element_type=jnp.float32) + b
        return jnp.maximum(g_new, 0.0) if relu else g_new

    g = layer(g, p_ref[:, _W2_COLS[0]:_W2_COLS[1]],
              p_ref[:, _B_COL0 + 1:_B_COL0 + 2], True)
    g = layer(g, p_ref[:, _W3_COLS[0]:_W3_COLS[1]],
              p_ref[:, _B_COL0 + 2:_B_COL0 + 3], True)
    g = layer(g, p_ref[:, _W4_COLS[0]:_W4_COLS[1]],
              p_ref[:, _B_COL0 + 3:_B_COL0 + 4], False)   # no activation on last layer

    # ---- fused node selection: output column j = embedding of node idx[j] ---
    o_ref[...] = jnp.dot(g, sel_ref[...], preferred_element_type=jnp.float32)


@functools.partial(jax.jit, static_argnames=("n_total", "num_graphs"))
def _gcn_apply(a_pad, sel_pad, nbIp, p_slab, *, n_total, num_graphs):
    """Run the fused Pallas GCN; returns [num_graphs, HID]."""
    x_row = jnp.zeros((1, NP), jnp.float32).at[0, :n_total].set(
        nbIp.astype(jnp.float32))

    spec = pl.BlockSpec(memory_space=pltpu.MemorySpace.VMEM)
    cost = pl.CostEstimate(
        flops=2 * (NUM_LAYERS + 1) * HID * NP * NP,          # 4x G·Â + selection
        transcendentals=0,
        bytes_accessed=(2 * NP * NP + 2 * HID * NP + NP) * 4)

    sel_out = pl.pallas_call(
        gcn4_kernel,
        out_shape=jax.ShapeDtypeStruct((HID, NP), jnp.float32),
        in_specs=[spec, spec, spec, spec],
        out_specs=spec,
        cost_estimate=cost,
    )(a_pad, sel_pad, x_row, p_slab)

    # Static slice + transpose of a tiny (HID, num_graphs) slab; fused by XLA.
    return sel_out[:, :num_graphs].T


# --------------------------- host-side plan building ------------------------

def _pack_params(weights, biases):
    """Pack all GCN parameters into one (HID, NP) f32 slab (host-side, once)."""
    p = np.zeros((HID, NP), np.float32)
    p[:, _W1_COL:_W1_COL + 1] = np.asarray(weights[0], np.float32).reshape(HID, 1)
    for (c0, c1), w in zip((_W2_COLS, _W3_COLS, _W4_COLS), weights[1:]):
        p[:, c0:c1] = np.asarray(w, np.float32)
    for j, b in enumerate(biases):
        p[:, _B_COL0 + j:_B_COL0 + j + 1] = np.asarray(b, np.float32).reshape(HID, 1)
    return jnp.asarray(p)


def _build_adj_and_sel(graph_edges, graph_sizes, node_local_indices):
    """Block-diagonal batched adjacency with GCN normalization
    D^{-1/2}(A+I)D^{-1/2}, zero-padded to (NP, NP), plus a one-hot node
    selection matrix S.  Pure numpy -> no device dispatches; cached by caller.

    Note: duplicate edges collapse to weight 1 (same as the previous version);
    PyG's scatter-add would double-count them."""
    n_total = int(sum(graph_sizes))
    A = np.zeros((n_total, n_total), np.float32)
    off = 0
    for ei, n in zip(graph_edges, graph_sizes):
        ei = np.asarray(ei)
        A[off + ei[1], off + ei[0]] = 1.0
        off += n
    A += np.eye(n_total, dtype=np.float32)                  # add self loops
    dinv = 1.0 / np.sqrt(A.sum(axis=1))
    A = A * dinv[:, None] * dinv[None, :]
    a_pad = np.zeros((NP, NP), np.float32)
    a_pad[:n_total, :n_total] = A

    starts = np.concatenate([[0], np.cumsum(graph_sizes)[:-1]]).astype(np.int64)
    idx = starts + np.asarray(node_local_indices, np.int64)
    sel = np.zeros((NP, NP), np.float32)
    sel[idx, np.arange(len(idx))] = 1.0                     # column j picks node idx[j]
    return jnp.asarray(a_pad), jnp.asarray(sel), idx


def _topology_key(graph_edges, graph_sizes, node_local_indices):
    edge_key = tuple((np.asarray(e).shape, np.asarray(e, np.int64).tobytes())
                     for e in graph_edges)
    return (edge_key, tuple(int(n) for n in graph_sizes),
            tuple(int(i) for i in node_local_indices))


class BGPGNNPallas:
    """Mirrors BGP_GNN.forward: x = nbIp.reshape(-1,1); run GCN(1, 8, layers=4)
    on the batched graph; return the embedding of the queried node per graph."""

    def __init__(self, weights, biases):
        self.p_slab = _pack_params(weights, biases)     # packed once
        self._plan_cache = {}                           # (Â, S) per topology+query

    def __call__(self, graph_edges, graph_sizes, nbIp, node_local_indices):
        key = _topology_key(graph_edges, graph_sizes, node_local_indices)
        plan = self._plan_cache.get(key)
        if plan is None:
            plan = _build_adj_and_sel(graph_edges, graph_sizes, node_local_indices)
            self._plan_cache[key] = plan
        a_pad, sel_pad, _ = plan
        return _gcn_apply(a_pad, sel_pad, jnp.asarray(nbIp), self.p_slab,
                          n_total=int(sum(graph_sizes)),
                          num_graphs=len(graph_sizes))


# --------------------------------- reference ---------------------------------

def _reference_forward(a_pad, graph_sizes, nbIp, node_local_indices,
                       weights, biases):
    """Plain-JAX node-major reference (same math, no Pallas)."""
    n_total = int(sum(graph_sizes))
    A = a_pad[:n_total, :n_total]
    h = jnp.asarray(nbIp, jnp.float32).reshape(-1, 1)
    for i, (W, b) in enumerate(zip(weights, biases)):
        h = A @ (h @ W.T) + b[None, :]
        if i < len(weights) - 1:
            h = jnp.maximum(h, 0.0)
    starts, s = [], 0
    for n in graph_sizes:
        starts.append(s)
        s += n
    idx = jnp.array([st + li for st, li in zip(starts, node_local_indices)],
                    jnp.int32)
    return h[idx]


if __name__ == "__main__":
    key = jax.random.PRNGKey(0)

    # ---- small deterministic "batch" of 2 graphs, 12 nodes each ------------
    n_per = 12
    graph_sizes = [n_per, n_per]

    def make_edges(n):
        pairs = []
        for i in range(n):
            j = (i + 1) % n           # ring
            k = (i + 3) % n           # chord
            pairs += [(i, j), (j, i), (i, k), (k, i)]
        src = jnp.array([p[0] for p in pairs], jnp.int32)
        dst = jnp.array([p[1] for p in pairs], jnp.int32)
        return jnp.stack([src, dst])  # [2, E], undirected (both directions)

    graph_edges = [make_edges(n_per), make_edges(n_per)]

    key, k_x = jax.random.split(key)
    nbIp = jax.random.uniform(k_x, (sum(graph_sizes),), jnp.float32, 0.0, 50.0)

    # ---- deterministic GCN parameters (GCN(in=1, hidden=8, layers=4)) ------
    layer_dims = [(HID, 1)] + [(HID, HID)] * (NUM_LAYERS - 1)
    weights, biases = [], []
    for fo, fi in layer_dims:
        key, kw, kb = jax.random.split(key, 3)
        weights.append(jax.random.normal(kw, (fo, fi), jnp.float32) * 0.5)
        biases.append(jax.random.normal(kb, (fo,), jnp.float32) * 0.1)

    model = BGPGNNPallas(weights, biases)

    # two queries on the same topology (second call exercises the Â/S caches
    # for a fresh query and the jit cache for the kernel)
    queries = [[3, 5], [7, 0]]
    ok = True
    for node_local_indices in queries:
        out = model(graph_edges, graph_sizes, nbIp, node_local_indices)
        out = jax.block_until_ready(out)

        a_pad, _, _ = _build_adj_and_sel(graph_edges, graph_sizes,
                                         node_local_indices)
        ref = _reference_forward(a_pad, graph_sizes, nbIp, node_local_indices,
                                 weights, biases)

        ok &= out.shape == (len(graph_sizes), HID)
        ok &= bool(jnp.allclose(out, ref, atol=1e-4, rtol=1e-4))

    assert ok
    print("KERNEL_OK")
</pallas_src>

<mosaic_0001>
module attributes {stable_mosaic.version = 11 : i64} {
  func.func @gcn4_kernel(%arg0: memref<128x128xf32, #tpu.memory_space<vmem>>, %arg1: memref<128x128xf32, #tpu.memory_space<vmem>>, %arg2: memref<1x128xf32, #tpu.memory_space<vmem>>, %arg3: memref<8x128xf32, #tpu.memory_space<vmem>>, %arg4: memref<8x128xf32, #tpu.memory_space<vmem>>) attributes {dimension_semantics = [], scalar_prefetch = 0 : i64, scratch_operands = 0 : i64, tpu.core_type = #tpu.core_type<tc>} {
    %c0 = arith.constant 0 : index
    %c0_0 = arith.constant 0 : index
    %0 = vector.load %arg0[%c0, %c0_0] : memref<128x128xf32, #tpu.memory_space<vmem>>, vector<128x128xf32>
    %c0_1 = arith.constant 0 : index
    %c0_2 = arith.constant 0 : index
    %1 = vector.load %arg3[%c0_1, %c0_2] : memref<8x128xf32, #tpu.memory_space<vmem>>, vector<8x1xf32>
    %c0_3 = arith.constant 0 : index
    %c32 = arith.constant 32 : index
    %2 = vector.load %arg3[%c0_3, %c32] : memref<8x128xf32, #tpu.memory_space<vmem>>, vector<8x1xf32>
    %c0_4 = arith.constant 0 : index
    %c0_5 = arith.constant 0 : index
    %3 = vector.load %arg2[%c0_4, %c0_5] : memref<1x128xf32, #tpu.memory_space<vmem>>, vector<1x128xf32>
    %4 = vector.broadcast %1 : vector<8x1xf32> to vector<8x128xf32>
    %5 = vector.broadcast %3 : vector<1x128xf32> to vector<8x128xf32>
    %6 = arith.mulf %4, %5 : vector<8x128xf32>
    %cst = arith.constant dense<0.000000e+00> : vector<8x128xf32>
    %7 = tpu.matmul %6, %0, %cst {dimension_numbers = #tpu.dot_dimension_numbers<[1], [0], [0], [1], [0, 0, 1, 1], [], []>} : vector<8x128xf32>, vector<128x128xf32>, vector<8x128xf32> -> vector<8x128xf32>
    %8 = vector.broadcast %2 : vector<8x1xf32> to vector<8x128xf32>
    %9 = arith.addf %7, %8 : vector<8x128xf32>
    %cst_6 = arith.constant 0.000000e+00 : f32
    %10 = vector.broadcast %cst_6 : f32 to vector<8x128xf32>
    %11 = arith.maximumf %9, %10 : vector<8x128xf32>
    %c0_7 = arith.constant 0 : index
    %c8 = arith.constant 8 : index
    %12 = vector.load %arg3[%c0_7, %c8] : memref<8x128xf32, #tpu.memory_space<vmem>>, vector<8x8xf32>
    %c0_8 = arith.constant 0 : index
    %c33 = arith.constant 33 : index
    %13 = vector.load %arg3[%c0_8, %c33] : memref<8x128xf32, #tpu.memory_space<vmem>>, vector<8x1xf32>
    %cst_9 = arith.constant dense<0.000000e+00> : vector<8x128xf32>
    %14 = tpu.matmul %12, %11, %cst_9 {dimension_numbers = #tpu.dot_dimension_numbers<[1], [0], [0], [1], [0, 0, 1, 1], [], []>} : vector<8x8xf32>, vector<8x128xf32>, vector<8x128xf32> -> vector<8x128xf32>
    %cst_10 = arith.constant dense<0.000000e+00> : vector<8x128xf32>
    %15 = tpu.matmul %14, %0, %cst_10 {dimension_numbers = #tpu.dot_dimension_numbers<[1], [0], [0], [1], [0, 0, 1, 1], [], []>} : vector<8x128xf32>, vector<128x128xf32>, vector<8x128xf32> -> vector<8x128xf32>
    %16 = vector.broadcast %13 : vector<8x1xf32> to vector<8x128xf32>
    %17 = arith.addf %15, %16 : vector<8x128xf32>
    %cst_11 = arith.constant 0.000000e+00 : f32
    %18 = vector.broadcast %cst_11 : f32 to vector<8x128xf32>
    %19 = arith.maximumf %17, %18 : vector<8x128xf32>
    %c0_12 = arith.constant 0 : index
    %c16 = arith.constant 16 : index
    %20 = vector.load %arg3[%c0_12, %c16] : memref<8x128xf32, #tpu.memory_space<vmem>>, vector<8x8xf32>
    %c0_13 = arith.constant 0 : index
    %c34 = arith.constant 34 : index
    %21 = vector.load %arg3[%c0_13, %c34] : memref<8x128xf32, #tpu.memory_space<vmem>>, vector<8x1xf32>
    %cst_14 = arith.constant dense<0.000000e+00> : vector<8x128xf32>
    %22 = tpu.matmul %20, %19, %cst_14 {dimension_numbers = #tpu.dot_dimension_numbers<[1], [0], [0], [1], [0, 0, 1, 1], [], []>} : vector<8x8xf32>, vector<8x128xf32>, vector<8x128xf32> -> vector<8x128xf32>
    %cst_15 = arith.constant dense<0.000000e+00> : vector<8x128xf32>
    %23 = tpu.matmul %22, %0, %cst_15 {dimension_numbers = #tpu.dot_dimension_numbers<[1], [0], [0], [1], [0, 0, 1, 1], [], []>} : vector<8x128xf32>, vector<128x128xf32>, vector<8x128xf32> -> vector<8x128xf32>
    %24 = vector.broadcast %21 : vector<8x1xf32> to vector<8x128xf32>
    %25 = arith.addf %23, %24 : vector<8x128xf32>
    %cst_16 = arith.constant 0.000000e+00 : f32
    %26 = vector.broadcast %cst_16 : f32 to vector<8x128xf32>
    %27 = arith.maximumf %25, %26 : vector<8x128xf32>
    %c0_17 = arith.constant 0 : index
    %c24 = arith.constant 24 : index
    %28 = vector.load %arg3[%c0_17, %c24] : memref<8x128xf32, #tpu.memory_space<vmem>>, vector<8x8xf32>
    %c0_18 = arith.constant 0 : index
    %c35 = arith.constant 35 : index
    %29 = vector.load %arg3[%c0_18, %c35] : memref<8x128xf32, #tpu.memory_space<vmem>>, vector<8x1xf32>
    %cst_19 = arith.constant dense<0.000000e+00> : vector<8x128xf32>
    %30 = tpu.matmul %28, %27, %cst_19 {dimension_numbers = #tpu.dot_dimension_numbers<[1], [0], [0], [1], [0, 0, 1, 1], [], []>} : vector<8x8xf32>, vector<8x128xf32>, vector<8x128xf32> -> vector<8x128xf32>
    %cst_20 = arith.constant dense<0.000000e+00> : vector<8x128xf32>
    %31 = tpu.matmul %30, %0, %cst_20 {dimension_numbers = #tpu.dot_dimension_numbers<[1], [0], [0], [1], [0, 0, 1, 1], [], []>} : vector<8x128xf32>, vector<128x128xf32>, vector<8x128xf32> -> vector<8x128xf32>
    %32 = vector.broadcast %29 : vector<8x1xf32> to vector<8x128xf32>
    %33 = arith.addf %31, %32 : vector<8x128xf32>
    %c0_21 = arith.constant 0 : index
    %c0_22 = arith.constant 0 : index
    %34 = vector.load %arg1[%c0_21, %c0_22] : memref<128x128xf32, #tpu.memory_space<vmem>>, vector<128x128xf32>
    %cst_23 = arith.constant dense<0.000000e+00> : vector<8x128xf32>
    %35 = tpu.matmul %33, %34, %cst_23 {dimension_numbers = #tpu.dot_dimension_numbers<[1], [0], [0], [1], [0, 0, 1, 1], [], []>} : vector<8x128xf32>, vector<128x128xf32>, vector<8x128xf32> -> vector<8x128xf32>
    %c0_24 = arith.constant 0 : index
    %c0_25 = arith.constant 0 : index
    %36 = vector.load %arg4[%c0_24, %c0_25] : memref<8x128xf32, #tpu.memory_space<vmem>>, vector<8x128xf32>
    tpu.vector_store %arg4[%c0_24, %c0_25], %35 {strides = array<i32>} : memref<8x128xf32, #tpu.memory_space<vmem>>, vector<8x128xf32>,
    return
  }
}

</mosaic_0001>

<bundles_post_ra>
// kernel: _gcn_apply.1
= control target key start
LH: loop header
LB: loop body
LE: loop exit
PB: predicated region body
PF: predicated region fallthrough
CT: control target
= control target key end

     0   :  { %9 = vsyncpa [#allocation3], 0  ;;  %s526_s0 = inlined_call_operand.hbm [shape: f32[128,128], index: 0, kind: input, shape index: {}]   ;;  %s527_s1 = inlined_call_operand.hbm [shape: f32[128,128], index: 1, kind: input, shape index: {}]   ;;  %s528_s2 = inlined_call_operand.vmem [shape: f32[1,128], index: 2, kind: input, shape index: {}]   ;;  %s529_s3 = inlined_call_operand.vmem [shape: f32[8,128], index: 3, kind: input, shape index: {}]   ;;  %s530_s4 = inlined_call_operand.vmem [shape: f32[8,128], index: 4, kind: output, shape index: {}]  }
   0x1   :  { %s15_s17 = sshll.u32 %s526_s0, 4  ;;  %s16_s17 = int_to_ptr.hbm [resolvable:$true] %s15_s17 }
   0x2   :  { %10 = vsyncpa [#allocation5], 0  ;;  %s365_s18 = smov [#allocation2]   ;;  %s28_s22 = sshll.u32 %s527_s1, 4  ;;  %s29_s22 = int_to_ptr.hbm [resolvable:$true] %s28_s22 }
   0x3   :  { %s17_s19 = sshll.u32 %s365_s18, 4  ;;  %s366_s23 = smov 128   ;;  %s18_s19 = int_to_ptr.vmem [resolvable:$true] %s17_s19 }
   0x4   :  { %s367_s24 = smov 8   ;;  %s368_s25 = smov [#allocation4]  }
   0x5   :  { %23 = dma.hbm_to_vmem [thread:$0]  %s16_s17, 2048, %s18_s19, [#allocation3], %s366_s23, %s366_s23, %s367_s24  }
   0x6   :  { %s30_s26 = sshll.u32 %s368_s25, 4  ;;  %s31_s26 = int_to_ptr.vmem [resolvable:$true] %s30_s26 }
   0x7   :  { %36 = dma.hbm_to_vmem [thread:$0]  %s29_s22, 2048, %s31_s26, [#allocation5], %s366_s23, %s366_s23, %s367_s24  }
   0x8   :  { %361 = dma.done.wait [#allocation3], 2048  }
   0x9   :  { %362 = vsyncadd [#allocation3], 4294965248 }
   0xa   :  { %363 = dma.done.wait [#allocation5], 2048  }
   0xb   :  { %364 = vsyncadd [#allocation5], 4294965248  ;;  %v369_v0 = vmov 0   ;;  %v411_v1 = vld [vmem:[%s529_s3] sm:$0xff]  ;;  %v413_v2 = vld [vmem:[#allocation2 + $0x78] sm:$0xff]  ;;  %s370_s1 = smov 120  }
   0xc   :  { %306 = vset.pattern.permute.xlu0 %v369_v0  ;;  %v415_v3 = vld [vmem:[#allocation2 + $0x70] sm:$0xff]  ;;  %80 = vmatpush.msra.mxu0 %v413_v2  ;;  %v419_v4 = vld [vmem:[#allocation2 + $0x68] sm:$0xff]  ;;  %v424_v5 = vld [vmem:[#allocation2 + $0x60] sm:$0xff]  ;;  %v371_v18 = vmov 32   ;;  %vm103_vm0 = vcmask 64512   ;;  %s372_s29 = smov 112  }
   0xd   :  { %69 = vperm.xlu0 %306, %v411_v1   ;;  %101 = vrot.lane.b32.xlu1 %v411_v1, %s370_s1  ;;  %v428_v6 = vld [vmem:[#allocation2 + $0x58] sm:$0xff]  ;;  %v432_v7 = vld [vmem:[#allocation2 + $0x50] sm:$0xff]  ;;  %v436_v8 = vld [vmem:[#allocation2 + $0x48] sm:$0xff]  ;;  %v373_v27 = vmov 33   ;;  %v375_v34 = vmov 34   ;;  %v376_v43 = vmov 35  }
   0xe   :  { %130 = vmatpush.msra.mxu2 %v413_v2  ;;  %81 = vmatpush.msra.mxu0 %v415_v3  ;;  %v440_v9 = vld [vmem:[#allocation2 + $0x40] sm:$0xff]  ;;  %v444_v10 = vld [vmem:[#allocation2 + $0x38] sm:$0xff]  ;;  %v448_v11 = vld [vmem:[#allocation2 + $0x30] sm:$0xff] }
   0xf   :  { %v452_v12 = vld [vmem:[#allocation2 + $0x28] sm:$0xff]  ;;  %v456_v13 = vld [vmem:[#allocation2 + $0x20] sm:$0xff]  ;;  %v460_v14 = vld [vmem:[#allocation2 + $0x18] sm:$0xff]  ;;  %151 = vrot.lane.b32.xlu2 %v411_v1, %s372_s29  ;;  %308 = vset.pattern.permute.xlu1 %v373_v27 }
  0x10   :  { %131 = vmatpush.msra.mxu2 %v415_v3  ;;  %82 = vmatpush.msra.mxu0 %v419_v4  ;;  %v464_v15 = vld [vmem:[#allocation2 + $0x10] sm:$0xff]  ;;  %v471_v16 = vld [vmem:[#allocation2 + $0x8] sm:$0xff]  ;;  %v475_v17 = vld [vmem:[#allocation2] sm:$0xff] }
  0x11   :  { %v312_v19 = vld [vmem:[%s528_s2] ss:$0 sm:$0xff]  ;;  %s374_s2 = smov 104   ;;  %309 = vset.pattern.permute.xlu2 %v375_v34  ;;  %v263_v41 = vld [vmem:[#allocation4 + $0x78] sm:$0xff]  ;;  %v262_v42 = vld [vmem:[#allocation4 + $0x70] sm:$0xff] }
  0x12   :  { %132 = vmatpush.msra.mxu2 %v419_v4  ;;  %83 = vmatpush.msra.mxu0 %v424_v5  ;;  %v261_v44 = vld [vmem:[#allocation4 + $0x68] sm:$0xff]  ;;  %v260_v45 = vld [vmem:[#allocation4 + $0x60] sm:$0xff]  ;;  %v259_v46 = vld [vmem:[#allocation4 + $0x58] sm:$0xff] }
  0x13   :  { %v258_v47 = vld [vmem:[#allocation4 + $0x50] sm:$0xff]  ;;  %v257_v48 = vld [vmem:[#allocation4 + $0x48] sm:$0xff]  ;;  %v256_v49 = vld [vmem:[#allocation4 + $0x40] sm:$0xff] }
  0x14   :  { %133 = vmatpush.msra.mxu2 %v424_v5  ;;  %84 = vmatpush.msra.mxu0 %v428_v6  ;;  %v255_v50 = vld [vmem:[#allocation4 + $0x38] sm:$0xff]  ;;  %v254_v51 = vld [vmem:[#allocation4 + $0x30] sm:$0xff]  ;;  %v253_v52 = vld [vmem:[#allocation4 + $0x28] sm:$0xff] }
  0x15   :  { %307 = vset.pattern.permute.xlu0 %v371_v18  ;;  %127 = vperm.xlu1 %308, %v411_v1   ;;  %v252_v53 = vld [vmem:[#allocation4 + $0x20] sm:$0xff]  ;;  %v251_v54 = vld [vmem:[#allocation4 + $0x18] sm:$0xff]  ;;  %v250_v55 = vld [vmem:[#allocation4 + $0x10] sm:$0xff] }
  0x16   :  { %134 = vmatpush.msra.mxu2 %v428_v6  ;;  %85 = vmatpush.msra.mxu0 %v432_v7  ;;  %v249_v57 = vld [vmem:[#allocation4 + $0x8] sm:$0xff]  ;;  %v248_v58 = vld [vmem:[#allocation4] sm:$0xff] }
  0x17   :  { %77 = vperm.xlu0 %307, %v411_v1   ;;  %176 = vperm.xlu2 %309, %v411_v1  }
  0x18   :  { %135 = vmatpush.msra.mxu2 %v432_v7  ;;  %86 = vmatpush.msra.mxu0 %v436_v8 }
  0x1a   :  { %136 = vmatpush.msra.mxu2 %v436_v8  ;;  %87 = vmatpush.msra.mxu0 %v440_v9 }
  0x1c   :  { %137 = vmatpush.msra.mxu2 %v440_v9  ;;  %88 = vmatpush.msra.mxu0 %v444_v10 }
  0x1d   :  { %200 = vrot.lane.b32.xlu1 %v411_v1, %s374_s2 }
  0x1e   :  { %138 = vmatpush.msra.mxu2 %v444_v10  ;;  %89 = vmatpush.msra.mxu0 %v448_v11 }
  0x1f   :  { %310 = vset.pattern.permute.xlu2 %v376_v43  ;;  %311 = vset.pattern.permute.xlu0 %v376_v43 }
  0x20   :  { %139 = vmatpush.msra.mxu2 %v448_v11  ;;  %90 = vmatpush.msra.mxu0 %v452_v12 }
  0x21   :  { %225 = vperm.xlu2 %310, %v411_v1  }
  0x22   :  { %140 = vmatpush.msra.mxu2 %v452_v12  ;;  %91 = vmatpush.msra.mxu0 %v456_v13 }
  0x24   :  { %141 = vmatpush.msra.mxu2 %v456_v13  ;;  %92 = vmatpush.msra.mxu0 %v460_v14 }
  0x26   :  { %142 = vmatpush.msra.mxu2 %v460_v14  ;;  %93 = vmatpush.msra.mxu0 %v464_v15 }
  0x28   :  { %143 = vmatpush.msra.mxu2 %v464_v15  ;;  %94 = vmatpush.msra.mxu0 %v471_v16 }
  0x2a   :  { %144 = vmatpush.msra.mxu2 %v471_v16  ;;  %95 = vmatpush.msra.mxu0 %v475_v17 }
  0x2c   :  { %145 = vmatpush.msra.mxu2 %v475_v17  ;;  %264 = vmatpush.msrb.mxu0 %v263_v41 }
  0x2e   :  { %265 = vmatpush.msrb.mxu0 %v262_v42 }
  0x30   :  { %266 = vmatpush.msrb.mxu0 %v261_v44 }
  0x32   :  { %267 = vmatpush.msrb.mxu0 %v260_v45 }
  0x34   :  { %268 = vmatpush.msrb.mxu0 %v259_v46 }
  0x36   :  { %269 = vmatpush.msrb.mxu0 %v258_v47 }
  0x38   :  { %270 = vmatpush.msrb.mxu0 %v257_v48 }
  0x3a   :  { %271 = vmatpush.msrb.mxu0 %v256_v49 }
  0x3c   :  { %272 = vmatpush.msrb.mxu0 %v255_v50 }
  0x3e   :  { %273 = vmatpush.msrb.mxu0 %v254_v51 }
  0x40   :  { %274 = vmatpush.msrb.mxu0 %v253_v52 }
  0x42   :  { %275 = vmatpush.msrb.mxu0 %v252_v53 }
  0x44   :  { %276 = vmatpush.msrb.mxu0 %v251_v54 }
  0x46   :  { %277 = vmatpush.msrb.mxu0 %v250_v55 }
  0x48   :  { %278 = vmatpush.msrb.mxu0 %v249_v57 }
  0x4a   :  { %279 = vmatpush.msrb.mxu0 %v248_v58 }
  0x69   :  { %v152_v32 = vpop.permute.xlu2 %151 }
  0x71   :  { %v177_v36 = vpop.permute.xlu2 %176 }
  0x7b   :  { %v226_v59 = vpop.permute.xlu2 %225 }
  0x7f   :  { %v70_v20 = vpop.permute.xlu0 %69  ;;  %v102_v25 = vpop.permute.xlu1 %101 }
  0x80   :  { %v75_v21 = vmul.f32 %v312_v19, %v70_v20 }
  0x82   :  { %96 = vmatmul.f32.vlgmr.msra.gmra.mxu0 %v75_v21 }
  0x87   :  { %v128_v29 = vpop.permute.xlu1 %127 }
  0x89   :  { %v78_v22 = vpop.permute.xlu0 %77 }
  0x8f   :  { %v201_v40 = vpop.permute.xlu1 %200 }
  0xff   :  { %v97_v23 = vpop.f32.mrf.mxu0 }
 0x100   :  { %v98_v24 = vadd.f32 %v97_v23, %v78_v22 }
 0x102   :  { %v100_v26 = vmax.f32 %v98_v24, 0.0 }
 0x104   :  { %121 = vmatpush.msra.mxu1 %v100_v26 }
 0x105   :  { %291 = vmatmul.msk.f32.vlgmr.msra.gmra.mxu1 %vm103_vm0, %v102_v25 }
 0x106   :  { %179 = vmatpush.msrb.mxu1 %v413_v2 }
 0x108   :  { %180 = vmatpush.msrb.mxu1 %v415_v3 }
 0x10a   :  { %181 = vmatpush.msrb.mxu1 %v419_v4 }
 0x10c   :  { %182 = vmatpush.msrb.mxu1 %v424_v5 }
 0x10e   :  { %183 = vmatpush.msrb.mxu1 %v428_v6 }
 0x110   :  { %184 = vmatpush.msrb.mxu1 %v432_v7 }
 0x112   :  { %185 = vmatpush.msrb.mxu1 %v436_v8 }
 0x114   :  { %186 = vmatpush.msrb.mxu1 %v440_v9 }
 0x116   :  { %187 = vmatpush.msrb.mxu1 %v444_v10 }
 0x118   :  { %188 = vmatpush.msrb.mxu1 %v448_v11 }
 0x11a   :  { %189 = vmatpush.msrb.mxu1 %v452_v12 }
 0x11c   :  { %190 = vmatpush.msrb.mxu1 %v456_v13 }
 0x11e   :  { %191 = vmatpush.msrb.mxu1 %v460_v14 }
 0x120   :  { %192 = vmatpush.msrb.mxu1 %v464_v15 }
 0x122   :  { %193 = vmatpush.msrb.mxu1 %v471_v16 }
 0x124   :  { %194 = vmatpush.msrb.mxu1 %v475_v17 }
 0x182   :  { %v123_v28 = vpop.f32.mrf.mxu1 }
 0x183   :  { %146 = vmatmul.f32.vlgmr.msra.gmra.mxu2 %v123_v28 }
 0x206   :  { %v147_v30 = vpop.f32.mrf.mxu2 }
 0x207   :  { %v148_v31 = vadd.f32 %v147_v30, %v128_v29 }
 0x209   :  { %v150_v33 = vmax.f32 %v148_v31, 0.0 }
 0x20b   :  { %170 = vmatpush.msra.mxu3 %v150_v33 }
 0x20c   :  { %292 = vmatmul.msk.f32.vlgmr.msra.gmra.mxu3 %vm103_vm0, %v152_v32 }
 0x28f   :  { %v172_v35 = vpop.f32.mrf.mxu3 }
 0x290   :  { %195 = vmatmul.f32.vlgmr.msrb.gmra.mxu1 %v172_v35 }
 0x30d   :  { %v196_v37 = vpop.f32.mrf.mxu1 }
 0x30e   :  { %v197_v38 = vadd.f32 %v196_v37, %v177_v36 }
 0x310   :  { %v199_v39 = vmax.f32 %v197_v38, 0.0 }
 0x312   :  { %219 = vmatpush.msrb.mxu3 %v199_v39 }
 0x313   :  { %293 = vmatmul.msk.f32.vlgmr.msrb.gmra.mxu3 %vm103_vm0, %v201_v40 }
 0x314   :  { %228 = vmatpush.msra.mxu3 %v413_v2 }
 0x316   :  { %229 = vmatpush.msra.mxu3 %v415_v3 }
 0x318   :  { %230 = vmatpush.msra.mxu3 %v419_v4 }
 0x31a   :  { %231 = vmatpush.msra.mxu3 %v424_v5 }
 0x31c   :  { %232 = vmatpush.msra.mxu3 %v428_v6 }
 0x31e   :  { %233 = vmatpush.msra.mxu3 %v432_v7 }
 0x320   :  { %234 = vmatpush.msra.mxu3 %v436_v8 }
 0x322   :  { %235 = vmatpush.msra.mxu3 %v440_v9 }
 0x324   :  { %236 = vmatpush.msra.mxu3 %v444_v10 }
 0x326   :  { %237 = vmatpush.msra.mxu3 %v448_v11 }
 0x328   :  { %238 = vmatpush.msra.mxu3 %v452_v12 }
 0x32a   :  { %239 = vmatpush.msra.mxu3 %v456_v13 }
 0x32c   :  { %240 = vmatpush.msra.mxu3 %v460_v14 }
 0x32e   :  { %241 = vmatpush.msra.mxu3 %v464_v15 }
 0x330   :  { %242 = vmatpush.msra.mxu3 %v471_v16 }
 0x332   :  { %243 = vmatpush.msra.mxu3 %v475_v17 }
 0x396   :  { %v221_v56 = vpop.f32.mrf.mxu3 }
 0x397   :  { %244 = vmatmul.f32.vlgmr.msra.gmra.mxu3 %v221_v56 }
 0x41a   :  { %v245_v60 = vpop.f32.mrf.mxu3 }
 0x41b   :  { %v246_v61 = vadd.f32 %v245_v60, %v226_v59 }
 0x41d   :  { %280 = vmatmul.f32.vlgmr.msrb.gmra.mxu0 %v246_v61 }
 0x49a   :  { %v281_v62 = vpop.f32.mrf.mxu0 }
 0x49b   :  { %284 = vst [vmem:[%s530_s4] sm:$0xff] %v281_v62 }
 0x49c   :  { %289 = vsyncpa [#allocation3], 1 }
 0x49d   :  { %290 = vsyncpa [#allocation5], 1 }

</bundles_post_ra>
